<compile_context>
chip_gen: v5e
topology: v5e:2x2
jax: 0.10.0
libtpu: 0.0.40
codegen_flags: <defaults>
</compile_context>

<pallas_src>
import jax
import jax.numpy as jnp
from jax import lax
from jax.experimental import pallas as pl
from jax.experimental.pallas import tpu as pltpu

EPS = 1e-5
N_IN = 34
N_HID = 5

# ----------------------------------------------------------------------------
# Parameter slab layout, f32, shape (13, 34).  Sub-blocks are placed so no
# slice crosses an 8-sublane tile boundary:
#   rows 0:5 , cols 0:34 -> W1^T   (out=5, in=34)
#   row  5   , col  0    -> b3     (scalar)
#   rows 8:13, cols 0:5  -> W2^T   (out=5, in=5)
#   rows 8:13, col  5    -> gamma1 (5,)
#   rows 8:13, col  6    -> beta1  (5,)
#   rows 8:13, col  7    -> gamma2 (5,)
#   rows 8:13, col  8    -> beta2  (5,)
#   rows 8:13, col  9    -> W3     (5,)   stored as a column for the VPU fc3
# (fc1/fc2 biases intentionally absent: they cancel under training-mode BN)
# ----------------------------------------------------------------------------
SLAB_ROWS = 13
SLAB_COLS = N_IN


def _eq_net_ff_kernel(x_ref, slab_ref, o_ref):
    # x: (B, 34) f32 (leading problem axis squeezed away by the BlockSpec).
    # All compute runs in the transposed, lane-dense layout: activations are
    # (features, B) so the batch fills the 128-lane axis.
    x = x_ref[...]                              # (B, 34), already f32
    slab = slab_ref[...]                        # (13, 34)

    B = x.shape[0]
    inv_b = 1.0 / B                             # static at trace time

    w1_t = slab[0:5, :]                         # (5, 34)
    b3 = slab[5:6, 0:1]                         # (1, 1)
    w2_t = slab[8:13, 0:5]                      # (5, 5)
    g1 = slab[8:13, 5:6]                        # (5, 1)
    be1 = slab[8:13, 6:7]                       # (5, 1)
    g2 = slab[8:13, 7:8]                        # (5, 1)
    be2 = slab[8:13, 8:9]                       # (5, 1)
    w3_c = slab[8:13, 9:10]                     # (5, 1)

    # ---- fc1 on the MXU (K=34); bias cancels in training-mode BN -----------
    # h1[f, b] = sum_k W1^T[f, k] * x[b, k]
    h1 = lax.dot_general(w1_t, x, (((1,), (1,)), ((), ())),
                         preferred_element_type=jnp.float32)      # (5, B)

    # ---- BN1 (one-pass batch stats) + ReLU ----------------------------------
    s1 = jnp.sum(h1, axis=1, keepdims=True)                       # (5, 1)
    s2 = jnp.sum(h1 * h1, axis=1, keepdims=True)                  # (5, 1)
    mu = s1 * inv_b
    var = s2 * inv_b - mu * mu                                    # biased var
    h1 = jnp.maximum((h1 - mu) * (g1 * lax.rsqrt(var + EPS)) + be1, 0.0)

    # ---- fc2 off the MXU: 5 VPU broadcast-FMAs (bias cancels in BN) ---------
    h2 = w2_t[:, 0:1] * h1[0:1, :]                                # (5, B)
    for k in range(1, N_HID):
        h2 = h2 + w2_t[:, k:k + 1] * h1[k:k + 1, :]

    # ---- BN2 (one-pass batch stats) + ReLU ----------------------------------
    s1 = jnp.sum(h2, axis=1, keepdims=True)
    s2 = jnp.sum(h2 * h2, axis=1, keepdims=True)
    mu = s1 * inv_b
    var = s2 * inv_b - mu * mu
    h2 = jnp.maximum((h2 - mu) * (g2 * lax.rsqrt(var + EPS)) + be2, 0.0)

    # ---- fc3 off the MXU: broadcast-mul + sublane reduce; tanh-form sigmoid -
    h3 = jnp.sum(w3_c * h2, axis=0, keepdims=True) + b3           # (1, B)
    o_ref[...] = (0.5 * jnp.tanh(0.5 * h3) + 0.5).astype(o_ref.dtype)


def eq_net_ff_forward_batched(x, slab):
    """x: (P, B, 34) f32 -- P independent problems, each with its own
    training-mode BN statistics over its B rows.  Returns (P, B, 1) f32."""
    P, B, _ = x.shape
    out_t = pl.pallas_call(
        _eq_net_ff_kernel,
        out_shape=jax.ShapeDtypeStruct((P, 1, B), jnp.float32),
        grid=(P,),
        in_specs=[
            # Leading problem axis squeezed; (B, 34) equals the full trailing
            # array dims, so the (8, 128) block constraint is satisfied.
            pl.BlockSpec((None, B, N_IN), lambda p: (p, 0, 0)),
            # Same slab block every step -> stays resident, no re-DMA.
            pl.BlockSpec((SLAB_ROWS, SLAB_COLS), lambda p: (0, 0)),
        ],
        out_specs=pl.BlockSpec((None, 1, B), lambda p: (p, 0, 0)),
        compiler_params=pltpu.CompilerParams(
            dimension_semantics=("parallel",)),
    )(x, slab)
    # (P, 1, B) -> (P, B, 1): layout plumbing outside the kernel.
    return jnp.swapaxes(out_t, 1, 2)


def eq_net_ff_forward(x, slab):
    """Single-problem path. x: (B, 34) f32. Returns (B, 1) f32."""
    return eq_net_ff_forward_batched(x[None], slab)[0]


# ----------------------------------------------------------------------------
# Parameter construction / packing / pure-JAX reference
# ----------------------------------------------------------------------------
def init_params(key):
    """Deterministic parameter init mirroring the PyTorch module's shapes.
    Weights stored as (in_features, out_features); b1/b2 are kept here so the
    reference can prove they cancel under training-mode BN."""
    n = N_HID
    ks = jax.random.split(key, 6)

    def linear(kw, kb, fan_in, fan_out):
        bound = 1.0 / jnp.sqrt(float(fan_in))
        w = jax.random.uniform(kw, (fan_in, fan_out), jnp.float32, -bound, bound)
        b = jax.random.uniform(kb, (1, fan_out), jnp.float32, -bound, bound)
        return w, b

    w1, b1 = linear(ks[0], ks[1], N_IN, n)
    w2, b2 = linear(ks[2], ks[3], n, n)
    w3, b3 = linear(ks[4], ks[5], n, 1)

    g1 = jnp.ones((1, n), jnp.float32)
    beta1 = jnp.zeros((1, n), jnp.float32)
    g2 = jnp.ones((1, n), jnp.float32)
    beta2 = jnp.zeros((1, n), jnp.float32)

    return (w1, b1, g1, beta1, w2, b2, g2, beta2, w3, b3)


def pack_params(params):
    """Pack all kernel-relevant parameters into one (13, 34) f32 slab."""
    w1, _b1, g1, be1, w2, _b2, g2, be2, w3, b3 = params
    slab = jnp.zeros((SLAB_ROWS, SLAB_COLS), jnp.float32)
    slab = slab.at[0:5, :].set(w1.T)                    # W1^T (5, 34)
    slab = slab.at[5, 0].set(b3.reshape(()))            # b3
    slab = slab.at[8:13, 0:5].set(w2.T)                 # W2^T (5, 5)
    slab = slab.at[8:13, 5].set(g1.reshape(-1))         # gamma1
    slab = slab.at[8:13, 6].set(be1.reshape(-1))        # beta1
    slab = slab.at[8:13, 7].set(g2.reshape(-1))         # gamma2
    slab = slab.at[8:13, 8].set(be2.reshape(-1))        # beta2
    slab = slab.at[8:13, 9].set(w3.reshape(-1))         # W3 column (5,)
    return slab


def reference_forward(x, params):
    """Pure-JAX reference of the PyTorch forward (training-mode BN),
    INCLUDING the fc1/fc2 biases, to verify they cancel."""
    w1, b1, g1, be1, w2, b2, g2, be2, w3, b3 = params
    h = x @ w1 + b1
    mu, var = jnp.mean(h, 0, keepdims=True), jnp.var(h, 0, keepdims=True)
    h = jnp.maximum((h - mu) / jnp.sqrt(var + EPS) * g1 + be1, 0.0)
    h = h @ w2 + b2
    mu, var = jnp.mean(h, 0, keepdims=True), jnp.var(h, 0, keepdims=True)
    h = jnp.maximum((h - mu) / jnp.sqrt(var + EPS) * g2 + be2, 0.0)
    return jax.nn.sigmoid(h @ w3 + b3)


if __name__ == "__main__":
    key = jax.random.PRNGKey(0)
    k_x, k_p = jax.random.split(key)

    P, B = 4, 8                                    # 4 independent problems
    x = jax.random.normal(k_x, (P, B, N_IN), jnp.float32)
    params = init_params(k_p)
    slab = pack_params(params)

    # Gridded (multi-problem) path.
    out = jax.block_until_ready(eq_net_ff_forward_batched(x, slab))
    ref = jax.vmap(reference_forward, in_axes=(0, None))(x, params)
    assert out.shape == (P, B, 1)
    # Tolerance tightened from 2e-3 (old approx-reciprocal sigmoid) to 2e-4;
    # remaining slack covers EUP tanh rounding and the one-pass variance.
    assert jnp.allclose(out, ref, atol=2e-4, rtol=2e-4), "batched mismatch"

    # Single-problem (P=1) convenience path.
    out1 = jax.block_until_ready(eq_net_ff_forward(x[0], slab))
    assert out1.shape == (B, 1)
    assert jnp.allclose(out1, ref[0], atol=2e-4, rtol=2e-4), "single mismatch"

    print("KERNEL_OK")
</pallas_src>

<mosaic_0001>
module attributes {stable_mosaic.version = 11 : i64} {
  func.func @_eq_net_ff_kernel(%arg0: i32, %arg1: memref<1x8x34xf32, #tpu.memory_space<vmem>>, %arg2: memref<13x34xf32, #tpu.memory_space<vmem>>, %arg3: memref<1x1x8xf32, #tpu.memory_space<vmem>>) attributes {dimension_semantics = [#tpu.dimension_semantics<parallel>], iteration_bounds = array<i64: 4>, scalar_prefetch = 0 : i64, scratch_operands = 0 : i64, tpu.core_type = #tpu.core_type<tc>, window_params = [{transform_indices = @transform_0, window_bounds = array<i64: 1, 8, 34>}, {pipeline_mode = #tpu.pipeline_mode<synchronous>, transform_indices = @transform_1, window_bounds = array<i64: 13, 34>}, {transform_indices = @transform_2, window_bounds = array<i64: 1, 1, 8>}]} {
    %c0 = arith.constant 0 : index
    %c0_0 = arith.constant 0 : index
    %c0_1 = arith.constant 0 : index
    %0 = vector.load %arg1[%c0, %c0_0, %c0_1] : memref<1x8x34xf32, #tpu.memory_space<vmem>>, vector<1x8x34xf32>
    %1 = vector.shape_cast %0 : vector<1x8x34xf32> to vector<8x34xf32>
    %c0_2 = arith.constant 0 : index
    %c0_3 = arith.constant 0 : index
    %2 = vector.load %arg2[%c0_2, %c0_3] : memref<13x34xf32, #tpu.memory_space<vmem>>, vector<13x34xf32>
    %3 = vector.extract_strided_slice %2 {offsets = [0, 0], sizes = [5, 34], strides = [1, 1]} : vector<13x34xf32> to vector<5x34xf32>
    %4 = vector.extract_strided_slice %2 {offsets = [5, 0], sizes = [1, 1], strides = [1, 1]} : vector<13x34xf32> to vector<1x1xf32>
    %5 = vector.extract_strided_slice %2 {offsets = [8, 0], sizes = [5, 5], strides = [1, 1]} : vector<13x34xf32> to vector<5x5xf32>
    %6 = vector.extract_strided_slice %2 {offsets = [8, 5], sizes = [5, 1], strides = [1, 1]} : vector<13x34xf32> to vector<5x1xf32>
    %7 = vector.extract_strided_slice %2 {offsets = [8, 6], sizes = [5, 1], strides = [1, 1]} : vector<13x34xf32> to vector<5x1xf32>
    %8 = vector.extract_strided_slice %2 {offsets = [8, 7], sizes = [5, 1], strides = [1, 1]} : vector<13x34xf32> to vector<5x1xf32>
    %9 = vector.extract_strided_slice %2 {offsets = [8, 8], sizes = [5, 1], strides = [1, 1]} : vector<13x34xf32> to vector<5x1xf32>
    %10 = vector.extract_strided_slice %2 {offsets = [8, 9], sizes = [5, 1], strides = [1, 1]} : vector<13x34xf32> to vector<5x1xf32>
    %cst = arith.constant dense<0.000000e+00> : vector<5x8xf32>
    %11 = tpu.matmul %3, %1, %cst {dimension_numbers = #tpu.dot_dimension_numbers<[1], [1], [0], [0], [0, 0, 1, 0], [], []>} : vector<5x34xf32>, vector<8x34xf32>, vector<5x8xf32> -> vector<5x8xf32>
    %cst_4 = arith.constant dense<0.000000e+00> : vector<5xf32>
    %12 = vector.multi_reduction <add>, %11, %cst_4 [1] : vector<5x8xf32> to vector<5xf32>
    %13 = vector.shape_cast %12 : vector<5xf32> to vector<5x1xf32>
    %14 = arith.mulf %11, %11 : vector<5x8xf32>
    %cst_5 = arith.constant dense<0.000000e+00> : vector<5xf32>
    %15 = vector.multi_reduction <add>, %14, %cst_5 [1] : vector<5x8xf32> to vector<5xf32>
    %16 = vector.shape_cast %15 : vector<5xf32> to vector<5x1xf32>
    %cst_6 = arith.constant 1.250000e-01 : f32
    %17 = vector.broadcast %cst_6 : f32 to vector<5x1xf32>
    %18 = arith.mulf %13, %17 : vector<5x1xf32>
    %cst_7 = arith.constant 1.250000e-01 : f32
    %19 = vector.broadcast %cst_7 : f32 to vector<5x1xf32>
    %20 = arith.mulf %16, %19 : vector<5x1xf32>
    %21 = arith.mulf %18, %18 : vector<5x1xf32>
    %22 = arith.subf %20, %21 : vector<5x1xf32>
    %23 = vector.broadcast %18 : vector<5x1xf32> to vector<5x8xf32>
    %24 = arith.subf %11, %23 : vector<5x8xf32>
    %cst_8 = arith.constant 9.99999974E-6 : f32
    %25 = vector.broadcast %cst_8 : f32 to vector<5x1xf32>
    %26 = arith.addf %22, %25 : vector<5x1xf32>
    %27 = math.rsqrt %26 : vector<5x1xf32>
    %28 = arith.mulf %6, %27 : vector<5x1xf32>
    %29 = vector.broadcast %28 : vector<5x1xf32> to vector<5x8xf32>
    %30 = arith.mulf %24, %29 : vector<5x8xf32>
    %31 = vector.broadcast %7 : vector<5x1xf32> to vector<5x8xf32>
    %32 = arith.addf %30, %31 : vector<5x8xf32>
    %cst_9 = arith.constant 0.000000e+00 : f32
    %33 = vector.broadcast %cst_9 : f32 to vector<5x8xf32>
    %34 = arith.maximumf %32, %33 : vector<5x8xf32>
    %35 = vector.extract_strided_slice %5 {offsets = [0, 0], sizes = [5, 1], strides = [1, 1]} : vector<5x5xf32> to vector<5x1xf32>
    %36 = vector.extract_strided_slice %34 {offsets = [0, 0], sizes = [1, 8], strides = [1, 1]} : vector<5x8xf32> to vector<1x8xf32>
    %37 = vector.broadcast %35 : vector<5x1xf32> to vector<5x8xf32>
    %38 = vector.broadcast %36 : vector<1x8xf32> to vector<5x8xf32>
    %39 = arith.mulf %37, %38 : vector<5x8xf32>
    %40 = vector.extract_strided_slice %5 {offsets = [0, 1], sizes = [5, 1], strides = [1, 1]} : vector<5x5xf32> to vector<5x1xf32>
    %41 = vector.extract_strided_slice %34 {offsets = [1, 0], sizes = [1, 8], strides = [1, 1]} : vector<5x8xf32> to vector<1x8xf32>
    %42 = vector.broadcast %40 : vector<5x1xf32> to vector<5x8xf32>
    %43 = vector.broadcast %41 : vector<1x8xf32> to vector<5x8xf32>
    %44 = arith.mulf %42, %43 : vector<5x8xf32>
    %45 = arith.addf %39, %44 : vector<5x8xf32>
    %46 = vector.extract_strided_slice %5 {offsets = [0, 2], sizes = [5, 1], strides = [1, 1]} : vector<5x5xf32> to vector<5x1xf32>
    %47 = vector.extract_strided_slice %34 {offsets = [2, 0], sizes = [1, 8], strides = [1, 1]} : vector<5x8xf32> to vector<1x8xf32>
    %48 = vector.broadcast %46 : vector<5x1xf32> to vector<5x8xf32>
    %49 = vector.broadcast %47 : vector<1x8xf32> to vector<5x8xf32>
    %50 = arith.mulf %48, %49 : vector<5x8xf32>
    %51 = arith.addf %45, %50 : vector<5x8xf32>
    %52 = vector.extract_strided_slice %5 {offsets = [0, 3], sizes = [5, 1], strides = [1, 1]} : vector<5x5xf32> to vector<5x1xf32>
    %53 = vector.extract_strided_slice %34 {offsets = [3, 0], sizes = [1, 8], strides = [1, 1]} : vector<5x8xf32> to vector<1x8xf32>
    %54 = vector.broadcast %52 : vector<5x1xf32> to vector<5x8xf32>
    %55 = vector.broadcast %53 : vector<1x8xf32> to vector<5x8xf32>
    %56 = arith.mulf %54, %55 : vector<5x8xf32>
    %57 = arith.addf %51, %56 : vector<5x8xf32>
    %58 = vector.extract_strided_slice %5 {offsets = [0, 4], sizes = [5, 1], strides = [1, 1]} : vector<5x5xf32> to vector<5x1xf32>
    %59 = vector.extract_strided_slice %34 {offsets = [4, 0], sizes = [1, 8], strides = [1, 1]} : vector<5x8xf32> to vector<1x8xf32>
    %60 = vector.broadcast %58 : vector<5x1xf32> to vector<5x8xf32>
    %61 = vector.broadcast %59 : vector<1x8xf32> to vector<5x8xf32>
    %62 = arith.mulf %60, %61 : vector<5x8xf32>
    %63 = arith.addf %57, %62 : vector<5x8xf32>
    %cst_10 = arith.constant dense<0.000000e+00> : vector<5xf32>
    %64 = vector.multi_reduction <add>, %63, %cst_10 [1] : vector<5x8xf32> to vector<5xf32>
    %65 = vector.shape_cast %64 : vector<5xf32> to vector<5x1xf32>
    %66 = arith.mulf %63, %63 : vector<5x8xf32>
    %cst_11 = arith.constant dense<0.000000e+00> : vector<5xf32>
    %67 = vector.multi_reduction <add>, %66, %cst_11 [1] : vector<5x8xf32> to vector<5xf32>
    %68 = vector.shape_cast %67 : vector<5xf32> to vector<5x1xf32>
    %cst_12 = arith.constant 1.250000e-01 : f32
    %69 = vector.broadcast %cst_12 : f32 to vector<5x1xf32>
    %70 = arith.mulf %65, %69 : vector<5x1xf32>
    %cst_13 = arith.constant 1.250000e-01 : f32
    %71 = vector.broadcast %cst_13 : f32 to vector<5x1xf32>
    %72 = arith.mulf %68, %71 : vector<5x1xf32>
    %73 = arith.mulf %70, %70 : vector<5x1xf32>
    %74 = arith.subf %72, %73 : vector<5x1xf32>
    %75 = vector.broadcast %70 : vector<5x1xf32> to vector<5x8xf32>
    %76 = arith.subf %63, %75 : vector<5x8xf32>
    %cst_14 = arith.constant 9.99999974E-6 : f32
    %77 = vector.broadcast %cst_14 : f32 to vector<5x1xf32>
    %78 = arith.addf %74, %77 : vector<5x1xf32>
    %79 = math.rsqrt %78 : vector<5x1xf32>
    %80 = arith.mulf %8, %79 : vector<5x1xf32>
    %81 = vector.broadcast %80 : vector<5x1xf32> to vector<5x8xf32>
    %82 = arith.mulf %76, %81 : vector<5x8xf32>
    %83 = vector.broadcast %9 : vector<5x1xf32> to vector<5x8xf32>
    %84 = arith.addf %82, %83 : vector<5x8xf32>
    %cst_15 = arith.constant 0.000000e+00 : f32
    %85 = vector.broadcast %cst_15 : f32 to vector<5x8xf32>
    %86 = arith.maximumf %84, %85 : vector<5x8xf32>
    %87 = vector.broadcast %10 : vector<5x1xf32> to vector<5x8xf32>
    %88 = arith.mulf %87, %86 : vector<5x8xf32>
    %cst_16 = arith.constant dense<0.000000e+00> : vector<8xf32>
    %89 = vector.multi_reduction <add>, %88, %cst_16 [0] : vector<5x8xf32> to vector<8xf32>
    %90 = vector.shape_cast %89 : vector<8xf32> to vector<1x8xf32>
    %91 = vector.broadcast %4 : vector<1x1xf32> to vector<1x8xf32>
    %92 = arith.addf %90, %91 : vector<1x8xf32>
    %cst_17 = arith.constant 5.000000e-01 : f32
    %93 = vector.broadcast %cst_17 : f32 to vector<1x8xf32>
    %94 = arith.mulf %93, %92 : vector<1x8xf32>
    %95 = math.tanh %94 : vector<1x8xf32>
    %cst_18 = arith.constant 5.000000e-01 : f32
    %96 = vector.broadcast %cst_18 : f32 to vector<1x8xf32>
    %97 = arith.mulf %96, %95 : vector<1x8xf32>
    %cst_19 = arith.constant 5.000000e-01 : f32
    %98 = vector.broadcast %cst_19 : f32 to vector<1x8xf32>
    %99 = arith.addf %97, %98 : vector<1x8xf32>
    %c0_20 = arith.constant 0 : index
    %c0_21 = arith.constant 0 : index
    %c0_22 = arith.constant 0 : index
    %100 = vector.load %arg3[%c0_20, %c0_21, %c0_22] : memref<1x1x8xf32, #tpu.memory_space<vmem>>, vector<1x1x8xf32>
    %101 = vector.shape_cast %100 : vector<1x1x8xf32> to vector<1x8xf32>
    %102 = vector.shape_cast %99 : vector<1x8xf32> to vector<1x1x8xf32>
    tpu.vector_store %arg3[%c0_20, %c0_21, %c0_22], %102 {strides = array<i32>} : memref<1x1x8xf32, #tpu.memory_space<vmem>>, vector<1x1x8xf32>,
    return
  }
  func.func @transform_0(%arg0: i32) -> (i32, i32, i32) {
    %c0_i32 = arith.constant 0 : i32
    %c0_i32_0 = arith.constant 0 : i32
    %c0_i32_1 = arith.constant 0 : i32
    return %arg0, %c0_i32, %c0_i32_0 : i32, i32, i32
  }
  func.func @transform_1(%arg0: i32) -> (i32, i32) {
    %c0_i32 = arith.constant 0 : i32
    %c0_i32_0 = arith.constant 0 : i32
    %c0_i32_1 = arith.constant 0 : i32
    return %c0_i32, %c0_i32_0 : i32, i32
  }
  func.func @transform_2(%arg0: i32) -> (i32, i32, i32) {
    %c0_i32 = arith.constant 0 : i32
    %c0_i32_0 = arith.constant 0 : i32
    %c0_i32_1 = arith.constant 0 : i32
    return %arg0, %c0_i32, %c0_i32_0 : i32, i32, i32
  }
}

</mosaic_0001>

<bundles_post_ra>
// kernel: tpu_custom_call.1
= control target key start
LH: loop header
LB: loop body
LE: loop exit
PB: predicated region body
PF: predicated region fallthrough
CT: control target
= control target key end

     0   :  { %7 = vsyncpa [#allocation3], 0  ;;  %s844_s0 = inlined_call_operand.hbm [shape: f32[4,8,34], index: 0, kind: input, shape index: {}]   ;;  %s845_s1 = inlined_call_operand.hbm [shape: f32[13,34], index: 1, kind: input, shape index: {}]   ;;  %s846_s2 = inlined_call_operand.hbm [shape: f32[4,1,8], index: 2, kind: output, shape index: {}]  }
   0x1   :  { %9 = vsyncpa [#allocation3 + $0x1], 0 }
   0x2   :  { %10 = vsyncpa [#allocation6], 0 }
   0x3   :  { %11 = vsyncpa [#allocation4], 0 }
   0x4   :  { %13 = vsyncpa [#allocation4 + $0x1], 0  ;;  %s686_s9 = smov 0   ;;  %s688_s10 = smov 0  }
   0x5   :  { %s690_s11 = smov 0   ;;  %s692_s12 = smov 0  }
   0x6 LB: > { %s108_s15 = sshll.u32 %s845_s1, 4  ;;  %s710_s16 = sadd.s32 4294967295, %s656_s12   ;;  %s656_s12 = sphi %s692_s12, %s855_s12   ;;  %s652_s11 = sphi %s690_s11, %s854_s11   ;;  %s648_s10 = sphi %s688_s10, %s853_s10   ;;  %s644_s9 = sphi %s686_s9, %s852_s9   ;;  %s109_s15 = int_to_ptr.hbm [resolvable:$true] %s108_s15 }
   0x7   : > { %p428_p0 = scmp.ge.s32.totalorder %s656_s12, 1  ;;  %p40_p1 = scmp.eq.s32.totalorder %s710_s16, 0 }
   0x8   : > { %p97_p2 = scmp.lt.s32.totalorder %s656_s12, 5  ;;  %s658_s18 = smov [#allocation5]  }
   0x9   : > { %s110_s19 = sshll.u32 %s658_s18, 4  ;;  %s659_s20 = smov 128   ;;  %s111_s19 = int_to_ptr.vmem [resolvable:$true] %s110_s19 }
   0xa   : > { %p715_p3 = pnand %p428_p0, %p97_p2  ;;  %s660_s21 = smov 8  }
   0xb   : > { %s427_s22 = sadd.s32 4294967294, %s656_s12   ;;  %s725_s23 = sadd.s32 1, %s656_s12  }
   0xc   : > { %p448_p4 = pneg %p715_p3  ;;  %s26_s24 = sadd.s32 1, %s652_s11 }
   0xd   : > { %s23_s25 = ssub.s32 %s656_s12, %s725_s23  ;;  %p33_p6 = scmp.ne.s32.totalorder %s652_s11, %s648_s10 }
   0xe   : > { %p449_p5 = pnand %p448_p4, %p40_p1  ;;  %p24_p7 = scmp.eq.s32.totalorder %s23_s25, 0 }
   0xf   : > { %p34_p8 = scmp.eq.s32.totalorder %s656_s12, 0  ;;  %p39_p9 = scmp.ne.s32.totalorder %s648_s10, %s644_s9 }
  0x10   : > { %451 = dma.hbm_to_vmem [thread:$0]  (!%p449_p5), %s109_s15, 256, %s111_s19, [#allocation6], %s659_s20, %s659_s20, %s660_s21  }
  0x11   : > { %p84_p10 = scmp.eq.s32.totalorder %s710_s16, 3  ;;  %p741_p11 = por %p40_p1, %p39_p9 }
  0x12   : > { %s737_s26 = scalar_select %p24_p7, %s652_s11, %s26_s24  }
  0x13   : > { %p745_p12 = por %p84_p10, %p33_p6  ;;  %p90_p13 = scmp.eq.s32.totalorder %s427_s22, 3 }
  0x14   : > { %p35_p0 = por %p34_p8, %p33_p6  ;;  %s124_s29 = sand.u32 1, %s652_s11  }
  0x15   : > { %p750_p2 = por %p90_p13, %p39_p9  ;;  %p461_p4 = scmp.lt.s32.totalorder %s656_s12, 4 }
  0x16   : > { %s431_s3 = sshll.u32 %s124_s29, 3  ;;  %s432_s4 = sshll.u32 %s656_s12, 3 }
  0x17   : > { %s132_s7 = scalar_lea.hbm %s844_s0, %s432_s4  ;;  %s128_s13 = scalar_lea.vmem [#allocation2], %s431_s3 }
  0x18   : > { %s134_s8 = sshll.u32 %s132_s7, 4  ;;  %s136_s14 = sshll.u32 %s128_s13, 4  ;;  %s135_s8 = int_to_ptr.hbm [resolvable:$true] %s134_s8  ;;  %s137_s14 = int_to_ptr.vmem [resolvable:$true] %s136_s14 }
  0x19   : > { %p759_p5 = pnand %p461_p4, %p35_p0  ;;  %s125_s18 = scalar_lea.sflag [#allocation3], %s124_s29 }
  0x1a   : > { %s556_s19 = sshra.s32 %s135_s8, 4  ;;  %s563_s24 = scalar_lea.hbm %s844_s0, 32  ;;  %s557_s19 = int_to_ptr.hbm [resolvable:$true] %s556_s19 }
  0x1b   : > { %s558_s20 = scalar_lea.hbm %s557_s19, 8  ;;  %p560_p7 = pneg %p759_p5 }
  0x1c   : > { %p559_p6 = scmp.ne.s32.totalorder %s557_s19, %s558_s20  ;;  %p564_p10 = scmp.lt.s32.totalorder %s557_s19, %s844_s0 }
  0x1d   : > { %p565_p13 = scmp.lt.s32.totalorder %s563_s24, %s558_s20 }
  0x1e   : > { %p561_p8 = pnand %p560_p7, %p559_p6 }
  0x1f   : > { %p566_p0 = por %p565_p13, %p564_p10 }
  0x20   : > { %p562_p9 = pneg %p561_p8 }
  0x22   : > { %p567_p4 = pnand %p566_p0, %p562_p9 }
  0x24   : > { %570 = shalt.err (!%p567_p4)
}
  0x25   : > { %455 = dma.hbm_to_vmem [thread:$0]  (!%p759_p5), %s135_s8, 128, %s137_s14, %s125_s18  }
  0x26   : > { %145 = sbr.rel (%p715_p3) target bundleno = 766 (0x2fe), region = 28  ;;  %s776_s29 = sand.u32 (!%p715_p3), 1, %s648_s10  }
  0x27   : > { %s434_s4 = sshll.u32 (!%p715_p3), %s776_s29, 3  ;;  %s148_s5 = scalar_lea.sflag (!%p715_p3), [#allocation3], %s776_s29 }
  0x28   : > { %s151_s6 = scalar_lea.vmem (!%p715_p3), [#allocation2], %s434_s4 }
  0x2b   : > { %631 = dma.done.wait (%p741_p11), %s148_s5, 128  }
  0x2c   : > { %633 = vsyncadd (%p741_p11), %s148_s5, 4294967168 }
  0x2d   : > { %635 = dma.done.wait (%p40_p1), [#allocation6], 256  }
  0x2e   : > { %637 = vsyncadd (%p40_p1), [#allocation6], 4294967040  ;;  %vm180_vm0 = vcmask 277504   ;;  %v177_v0 = vld [vmem:[%s151_s6] sm:$0xff]  ;;  %v788_v1 = vld [vmem:[#allocation5] sm:$0xff]  ;;  %vm207_vm1 = vcmask 61440   ;;  %s347_s7 = scalar_lea.hbm %s846_s2, %s710_s16 }
  0x2f   : > { %436 = vmatpush.xpose.msk.msra.mxu0 %vm180_vm0, %v177_v0  ;;  %v661_v6 = vmov 5   ;;  %v793_v14 = vld [vmem:[#allocation5 + $0x8] sm:$0x1f]  ;;  %v662_v15 = vmov 2   ;;  %v663_v18 = vmov 0   ;;  %v664_v23 = vmov 1  }
  0x30   : > { %509 = vset.pattern.permute.xlu1 %v661_v6  ;;  %513 = vset.pattern.permute.xlu0 %v662_v15  ;;  %v665_v26 = vmov 4   ;;  %v666_v27 = vmov 6   ;;  %v667_v28 = vmov 3   ;;  %v668_v57 = vmov 7   ;;  %s176_s8 = scalar_lea.vmem [#allocation7], %s776_s29  ;;  %s351_s14 = sshll.u32 %s347_s7, 4  ;;  %s352_s14 = int_to_ptr.hbm [resolvable:$true] %s351_s14 }
  0x31   : > { %511 = vset.pattern.permute.xlu2 %v663_v18  ;;  %v669_v58 = vmov 9   ;;  %s349_s13 = sshll.u32 %s176_s8, 4  ;;  %vm336_vm8 = vcmask 62469   ;;  %s339_s15 = scalar_lea.sflag [#allocation4], %s776_s29  ;;  %s350_s13 = int_to_ptr.vmem [resolvable:$true] %s349_s13 }
  0x32   : > { %437 = vmatmul.msk.f32.vlgmr.msra.gmra.mxu0 %vm180_vm0, %v788_v1  ;;  %246 = vperm.xlu2 %511, %v793_v14   ;;  %s600_s18 = sshra.s32 %s352_s14, 4  ;;  %s606_s21 = scalar_lea.hbm %s846_s2, 4  ;;  %s601_s18 = int_to_ptr.hbm [resolvable:$true] %s600_s18 }
  0x33   : > { %s602_s19 = scalar_lea.hbm %s601_s18, 1  ;;  %p607_p5 = scmp.lt.s32.totalorder %s601_s18, %s846_s2 }
  0x34   : > { %p603_p1 = scmp.ne.s32.totalorder %s601_s18, %s602_s19  ;;  %p608_p6 = scmp.lt.s32.totalorder %s606_s21, %s602_s19 }
  0x36   : > { %p604_p3 = pnand %p603_p1, %p745_p12  ;;  %p609_p7 = por %p608_p6, %p607_p5 }
  0x38   : > { %p605_p11 = pneg %p604_p3 }
  0x3a   : > { %512 = vset.pattern.permute.xlu2 %v664_v23  ;;  %p610_p8 = pnand %p609_p7, %p605_p11 }
  0x3b   : > { %252 = vperm.xlu2 %512, %v793_v14  }
  0x43   : > { %515 = vset.pattern.permute.xlu2 %v665_v26 }
  0x44   : > { %273 = vperm.xlu2 %515, %v793_v14  }
  0x8c   : > { %v247_v29 = vpop.permute.xlu2 %246 }
  0x95   : > { %v253_v33 = vpop.permute.xlu2 %252 }
  0x9e   : > { %v274_v48 = vpop.permute.xlu2 %273 }
  0xaf   : > { %v204_v2 = vpop.f32.mrf.mxu0 }
  0xb0   : > { %v208_v3 = vsel %vm207_vm1, %v204_v2, 0.0  ;;  %v211_v4 = vmul.f32 %v204_v2, %v204_v2 }
  0xb1   : > { %209 = vadd.xlane.f32.xlu0 %v208_v3  ;;  %v670_v3 = vmov 8  }
  0xb2   : > { %v212_v5 = vsel %vm207_vm1, %v211_v4, 0.0  ;;  %517 = vset.pattern.permute.xlu2 %v670_v3 }
  0xb9   : > { %213 = vadd.xlane.f32.xlu0 %v212_v5 }
  0xcd   : > { %259 = vperm.xlu0 %513, %v793_v14  }
  0xd5   : > { %516 = vset.pattern.permute.xlu0 %v668_v57 }
 0x124   : > { %v210_v7 = vpop.xlane.xlu0 %209 }
 0x125   : > { %v215_v8 = vmul.f32 0.125, %v210_v7 }
 0x127   : > { %v217_v10 = vmul.f32 %v215_v8, %v215_v8  ;;  %v219_v31 = vsub.f32 %v204_v2, %v215_v8 }
 0x12c   : > { %v214_v9 = vpop.xlane.xlu0 %213 }
 0x12d   : > { %v216_v11 = vmul.f32 0.125, %v214_v9 }
 0x12f   : > { %v218_v12 = vsub.f32 %v216_v11, %v217_v10 }
 0x131   : > { %v220_v13 = vadd.f32 1e-05, %v218_v12 }
 0x133   : > { %520 = vrsqrt.f32 %v220_v13  ;;  %vm227_vm3 = vweird.f32 %v220_v13 }
 0x139   : > { %v521_v16 = vpop.eup %520 }
 0x13a   : > { %v222_v17 = vmul.f32 %v521_v16, %v220_v13  ;;  %vm228_vm2 = vweird.f32 %v521_v16 }
 0x13b   : > { %vm229_vm4 = vmor %vm227_vm3, %vm228_vm2 }
 0x13c   : > { %v223_v19 = vmul.f32 %v521_v16, %v222_v17 }
 0x13e   : > { %v224_v20 = vmul.f32 0.5, %v223_v19 }
 0x13f   : > { %v260_v40 = vpop.permute.xlu0 %259 }
 0x140   : > { %v225_v21 = vsub.f32 1.5, %v224_v20 }
 0x142   : > { %v226_v22 = vmul.f32 %v521_v16, %v225_v21 }
 0x144   : > { %v230_v24 = vsel %vm229_vm4, %v521_v16, %v226_v22 }
 0x145   : > { %v231_v25 = vmul.f32 %v230_v24, %v793_v14 }
 0x147   : > { %234 = vperm.xlu1 %509, %v231_v25  }
 0x14f   : > { %510 = vset.pattern.permute.xlu1 %v666_v27 }
 0x150   : > { %240 = vperm.xlu1 %510, %v793_v14  }
 0x158   : > { %514 = vset.pattern.permute.xlu1 %v667_v28 }
 0x159   : > { %266 = vperm.xlu1 %514, %v793_v14  }
 0x161   : > { %518 = vset.pattern.permute.xlu1 %v669_v58 }
 0x1b9   : > { %v235_v30 = vpop.permute.xlu1 %234 }
 0x1ba   : > { %v237_v32 = vmul.f32 %v235_v30, %v219_v31 }
 0x1c2   : > { %v241_v34 = vpop.permute.xlu1 %240 }
 0x1c3   : > { %v243_v35 = vadd.f32 %v241_v34, %v237_v32 }
 0x1c5   : > { %v244_v36 = vmax.f32 %v243_v35, 0.0 }
 0x1c7   : > { %v249_v37 = vperm.slane %v244_v36, 0  ;;  %v255_v38 = vperm.slane %v244_v36, 1  ;;  %v262_v39 = vperm.slane %v244_v36, 2  ;;  %v269_v43 = vperm.slane %v244_v36, 3 }
 0x1c8   : > { %v276_v44 = vperm.slane %v244_v36, 4 }
 0x1c9   : > { %v250_v41 = vmul.f32 %v249_v37, %v247_v29  ;;  %v256_v42 = vmul.f32 %v255_v38, %v253_v33  ;;  %v263_v46 = vmul.f32 %v262_v39, %v260_v40 }
 0x1ca   : > { %v277_v51 = vmul.f32 %v276_v44, %v274_v48 }
 0x1cb   : > { %v257_v45 = vadd.f32 %v256_v42, %v250_v41  ;;  %v267_v47 = vpop.permute.xlu1 %266 }
 0x1cc   : > { %v270_v49 = vmul.f32 %v269_v43, %v267_v47 }
 0x1cd   : > { %v264_v50 = vadd.f32 %v263_v46, %v257_v45 }
 0x1cf   : > { %v271_v52 = vadd.f32 %v270_v49, %v264_v50 }
 0x1d1   : > { %v278_v53 = vadd.f32 %v277_v51, %v271_v52 }
 0x1d3   : > { %v279_v54 = vsel %vm207_vm1, %v278_v53, 0.0  ;;  %v282_v55 = vmul.f32 %v278_v53, %v278_v53 }
 0x1d4   : > { %280 = vadd.xlane.f32.xlu1 %v279_v54 }
 0x1d5   : > { %v283_v56 = vsel %vm207_vm1, %v282_v55, 0.0 }
 0x1d6   : > { %284 = vadd.xlane.f32.xlu2 %v283_v56 }
 0x1ed   : > { %316 = vperm.xlu1 %518, %v793_v14  }
 0x1ee   : > { %310 = vperm.xlu2 %517, %v793_v14  }
 0x247   : > { %v281_v59 = vpop.xlane.xlu1 %280 }
 0x248   : > { %v286_v60 = vmul.f32 0.125, %v281_v59 }
 0x249   : > { %v285_v61 = vpop.xlane.xlu2 %284 }
 0x24a   : > { %v288_v62 = vmul.f32 %v286_v60, %v286_v60  ;;  %v287_v63 = vmul.f32 0.125, %v285_v61  ;;  %v290_v12 = vsub.f32 %v278_v53, %v286_v60 }
 0x24c   : > { %v289_v0 = vsub.f32 %v287_v63, %v288_v62 }
 0x24e   : > { %v291_v2 = vadd.f32 1e-05, %v289_v0 }
 0x250   : > { %522 = vrsqrt.f32 %v291_v2  ;;  %vm298_vm6 = vweird.f32 %v291_v2 }
 0x251   : > { %v311_v15 = vpop.permute.xlu2 %310 }
 0x256   : > { %v523_v4 = vpop.eup %522 }
 0x257   : > { %v293_v5 = vmul.f32 %v523_v4, %v291_v2  ;;  %vm299_vm5 = vweird.f32 %v523_v4 }
 0x258   : > { %vm300_vm7 = vmor %vm298_vm6, %vm299_vm5 }
 0x259   : > { %v294_v6 = vmul.f32 %v523_v4, %v293_v5 }
 0x25b   : > { %v295_v7 = vmul.f32 0.5, %v294_v6 }
 0x25d   : > { %v296_v8 = vsub.f32 1.5, %v295_v7 }
 0x25f   : > { %v297_v9 = vmul.f32 %v523_v4, %v296_v8  ;;  %v317_v19 = vpop.permute.xlu1 %316 }
 0x261   : > { %v301_v10 = vsel %vm300_vm7, %v523_v4, %v297_v9 }
 0x262   : > { %v302_v11 = vmul.f32 %v301_v10, %v793_v14 }
 0x264   : > { %305 = vperm.xlu0 %516, %v302_v11  }
 0x26c   : > { %519 = vset.pattern.permute.xlu0 %v663_v18 }
 0x26d   : > { %328 = vperm.xlu0 %519, %v788_v1  }
 0x2d6   : > { %v306_v13 = vpop.permute.xlu0 %305 }
 0x2d7   : > { %v308_v16 = vmul.f32 %v306_v13, %v290_v12 }
 0x2d9   : > { %v313_v17 = vadd.f32 %v311_v15, %v308_v16 }
 0x2db   : > { %v314_v20 = vmax.f32 %v313_v17, 0.0 }
 0x2dd   : > { %v319_v21 = vmul.f32 %v317_v19, %v314_v20 }
 0x2df   : > { %v320_v22 = vsel %vm207_vm1, %v319_v21, 0.0  ;;  %v329_v18 = vpop.permute.xlu0 %328 }
 0x2e0   : > { %v321_v23 = vrot.slane %v320_v22, 4 }
 0x2e2   : > { %v322_v24 = vadd.f32 %v321_v23, %v320_v22 }
 0x2e4   : > { %v323_v14 = vrot.slane %v322_v24, 2 }
 0x2e6   : > { %v324_v25 = vadd.f32 %v323_v14, %v322_v24 }
 0x2e8   : > { %v325_v26 = vrot.slane %v324_v25, 1 }
 0x2ea   : > { %v326_v1 = vadd.f32 %v325_v26, %v324_v25 }
 0x2ec   : > { %v331_v27 = vadd.f32 %v329_v18, %v326_v1 }
 0x2ee   : > { %v332_v28 = vmul.f32 0.5, %v331_v27 }
 0x2f0   : > { %524 = vtanh.f32 %v332_v28 }
 0x2f6   : > { %v525_v29 = vpop.eup %524 }
 0x2f7   : > { %v334_v30 = vmul.f32 0.5, %v525_v29 }
 0x2f9   : > { %v335_v31 = vadd.f32 0.5, %v334_v30 }
 0x2fb   : > { %337 = vst.msk [vmem:[%s176_s8 - $0x5] sm:$0x20] %vm336_vm8, %v335_v31 }
 0x2fc   : > { %613 = shalt.err (!%p610_p8)
}
 0x2fd   : > { %446 = dma.vmem_to_hbm [thread:$0]  (%p745_p12), %s350_s13, 16, %s352_s14, %s339_s15  }
 0x2fe PF: > { %p463_p9 = scmp.ge.s32.totalorder %s656_s12, 2  ;;  %s363_s25 = sand.u32 1, %s644_s9  }
 0x2ff   : > { %s364_s3 = scalar_lea.sflag [#allocation4], %s363_s25 }
 0x300   : > { %p457_p10 = pnand %p463_p9, %p750_p2 }
 0x302   : > { %p458_p13 = pneg %p457_p10 }
 0x304   : > { %639 = dma.done.wait (%p458_p13), %s364_s3, 16  }
 0x305   : > { %641 = vsyncadd (%p458_p13), %s364_s3, 4294967280  ;;  %p16_p0 = scmp.ge.s32.totalorder %s725_s23, 6   ;;  %s852_s9 = smov %s648_s10 }
 0x306   : > { %s853_s10 = smov %s652_s11  ;;  %s854_s11 = smov %s737_s26 }
 0x307   : > { %s855_s12 = smov %s725_s23  ;;  %18 = sbr.rel (!%p16_p0) target bundleno = 6 (0x6), region = 77 }
 0x30c   :  { %369 = vsyncpa [#allocation3], 1 }
 0x30d   :  { %371 = vsyncpa [#allocation3 + $0x1], 1 }
 0x30e   :  { %372 = vsyncpa [#allocation6], 1 }
 0x30f   :  { %373 = vsyncpa [#allocation4], 1 }
 0x310   :  { %375 = vsyncpa [#allocation4 + $0x1], 1 }

</bundles_post_ra>
